<compile_context>
chip_gen: v7x
topology: tpu7x:2x2x1
jax: 0.10.0
libtpu: 0.0.40
codegen_flags: <defaults>
</compile_context>

<pallas_src>
import functools

import jax
import jax.numpy as jnp
from jax.experimental import pallas as pl
from jax.experimental.pallas import tpu as pltpu

EPS = 1e-6  # nn.PairwiseDistance default eps


def _triplet_loss_kernel(o1_ref, o2_ref, o3_ref, loss_ref, acc_ref, *,
                         margin, block_b, batch, mask_tail):
    j = pl.program_id(0)
    nj = pl.num_programs(0)

    # Zero the per-row partial-sum accumulator on the first tile.
    @pl.when(j == 0)
    def _():
        acc_ref[...] = jnp.zeros_like(acc_ref)

    a = o1_ref[...].astype(jnp.float32)
    p = o2_ref[...].astype(jnp.float32)
    n = o3_ref[...].astype(jnp.float32)

    # (a-p+e)^2 - (a-n+e)^2 == (n-p) * (2a - p - n + 2e)   (summed over D)
    # -> one elementwise multiply + ONE lane-axis reduction instead of two.
    prod = (n - p) * (2.0 * a - p - n + 2.0 * EPS)
    delta = jnp.sum(prod, axis=-1, keepdims=True)           # (block_b, 1)
    hinge = jnp.maximum(delta + margin, 0.0)                 # clamp(min=0)

    if mask_tail:
        # Only the LAST tile can read rows past the real batch end (the block
        # read is out-of-bounds there; whatever garbage those rows produce is
        # zeroed by the select below -- do not move the mask after the
        # accumulation). Full tiles skip the iota/compare/select entirely.
        @pl.when(j == nj - 1)
        def _():
            row0 = j * block_b
            row_ids = row0 + jax.lax.broadcasted_iota(
                jnp.int32, (block_b, 1), 0)
            acc_ref[...] += jnp.where(row_ids < batch, hinge, 0.0)

        @pl.when(j != nj - 1)
        def _():
            acc_ref[...] += hinge
    else:
        acc_ref[...] += hinge

    # Finalize once: single cross-sublane reduce + (1, 1) store.
    @pl.when(j == nj - 1)
    def _():
        loss_ref[...] = jnp.sum(acc_ref[...]).reshape(1, 1)


def _sublane_multiple(dtype):
    # 8 rows/vreg-sublane-tile for 4-byte dtypes, 16 for bf16, 32 for int8.
    return max(8, 32 // jnp.dtype(dtype).itemsize)


def _vmem_limits():
    """Generation-aware (input-buffer budget, scoped vmem limit) in bytes."""
    try:
        cap = int(pltpu.get_tpu_info().vmem_capacity_bytes)
    except Exception:
        cap = 64 * 2**20  # conservative fallback (v7x per-TC VMEM)
    # v5e/v6e: 128 MiB physical -> 64 MiB scoped limit, ~48 MiB input buffers.
    # v7x:      64 MiB physical -> 32 MiB scoped limit, ~24 MiB input buffers.
    limit = min(cap // 2, 64 * 2**20)
    budget = (limit * 3) // 4
    return budget, limit


def _pick_block_b(batch, feat, dtype, vmem_budget_bytes):
    """Largest sublane-multiple batch tile fitting the VMEM budget.

    VMEM use ~= 3 inputs x 2 pipeline buffers x block_b x D_padded x itemsize
    plus the lane-padded (block_b, 128) f32 accumulator.
    """
    itemsize = jnp.dtype(dtype).itemsize
    sublane = _sublane_multiple(dtype)
    d_pad = ((feat + 127) // 128) * 128          # lane padding of the feature dim
    per_row = 3 * 2 * d_pad * itemsize + 128 * 4
    bb = (vmem_budget_bytes // per_row) // sublane * sublane
    full = ((batch + sublane - 1) // sublane) * sublane
    bb = max(sublane, min(int(bb), full))
    return int(bb)


def triplet_loss(output1, output2, output3, margin=45.0, block_b=None):
    """output1/2/3: (B, D) arrays (anchor, positive, negative). Scalar f32 loss."""
    B, D = output1.shape
    vmem_budget, vmem_limit = _vmem_limits()
    sublane = _sublane_multiple(output1.dtype)
    if block_b is None:
        block_b = _pick_block_b(B, D, output1.dtype, vmem_budget)
    block_b = max(sublane, (int(block_b) // sublane) * sublane)

    num_tiles = pl.cdiv(B, block_b)
    mask_tail = (B % block_b) != 0               # static: last tile straddles B

    kernel = functools.partial(
        _triplet_loss_kernel,
        margin=float(margin),
        block_b=block_b,
        batch=B,
        mask_tail=mask_tail,
    )

    in_spec = pl.BlockSpec((block_b, D), lambda j: (j, 0))

    out = pl.pallas_call(
        kernel,
        out_shape=jax.ShapeDtypeStruct((1, 1), jnp.float32),
        grid_spec=pltpu.PrefetchScalarGridSpec(
            num_scalar_prefetch=0,
            grid=(num_tiles,),
            in_specs=[in_spec, in_spec, in_spec],
            out_specs=pl.BlockSpec((1, 1), lambda j: (0, 0)),
            scratch_shapes=[pltpu.VMEM((block_b, 1), jnp.float32)],
        ),
        compiler_params=pltpu.CompilerParams(
            dimension_semantics=("arbitrary",),
            vmem_limit_bytes=int(vmem_limit),
        ),
    )(output1, output2, output3)
    return out[0, 0]


def triplet_loss_ref(o1, o2, o3, margin=45.0):
    o1 = o1.astype(jnp.float32)
    o2 = o2.astype(jnp.float32)
    o3 = o3.astype(jnp.float32)
    d1sq = jnp.sum((o1 - o2 + EPS) ** 2, axis=-1)
    d2sq = jnp.sum((o1 - o3 + EPS) ** 2, axis=-1)
    return jnp.sum(jnp.maximum(d1sq - d2sq + margin, 0.0))


if __name__ == "__main__":
    key = jax.random.PRNGKey(0)

    # Case 1: small synthetic embedding batch (auto tile -> single full block,
    # no tail mask emitted).
    k1, k2, k3 = jax.random.split(key, 3)
    B, D = 16, 128
    o1 = jax.random.normal(k1, (B, D), dtype=jnp.float32)  # anchor
    o2 = jax.random.normal(k2, (B, D), dtype=jnp.float32)  # positive
    o3 = jax.random.normal(k3, (B, D), dtype=jnp.float32)  # negative
    loss = jax.block_until_ready(triplet_loss(o1, o2, o3, margin=45.0))
    ref = triplet_loss_ref(o1, o2, o3, margin=45.0)
    assert jnp.allclose(loss, ref, rtol=1e-4, atol=1e-2), (loss, ref)

    # Case 2: B not divisible by a forced small tile -> multi-step reduction
    # grid, tail-row masking on the last tile only.
    k4, k5, k6 = jax.random.split(jax.random.PRNGKey(1), 3)
    B2, D2 = 20, 256
    p1 = jax.random.normal(k4, (B2, D2), dtype=jnp.float32)
    p2 = jax.random.normal(k5, (B2, D2), dtype=jnp.float32)
    p3 = jax.random.normal(k6, (B2, D2), dtype=jnp.float32)
    loss2 = jax.block_until_ready(triplet_loss(p1, p2, p3, margin=45.0, block_b=8))
    ref2 = triplet_loss_ref(p1, p2, p3, margin=45.0)
    assert jnp.allclose(loss2, ref2, rtol=1e-4, atol=1e-2), (loss2, ref2)

    # Case 3: bf16 embeddings (halves HBM traffic; kernel accumulates in f32),
    # ragged D (not a multiple of 128) and B not a multiple of the bf16
    # sublane packing -> exercises padding-aware tile sizing + tail mask.
    k7, k8, k9 = jax.random.split(jax.random.PRNGKey(2), 3)
    B3, D3 = 24, 200
    q1 = jax.random.normal(k7, (B3, D3), dtype=jnp.float32).astype(jnp.bfloat16)
    q2 = jax.random.normal(k8, (B3, D3), dtype=jnp.float32).astype(jnp.bfloat16)
    q3 = jax.random.normal(k9, (B3, D3), dtype=jnp.float32).astype(jnp.bfloat16)
    loss3 = jax.block_until_ready(triplet_loss(q1, q2, q3, margin=45.0))
    ref3 = triplet_loss_ref(q1, q2, q3, margin=45.0)
    assert jnp.allclose(loss3, ref3, rtol=1e-3, atol=1e-1), (loss3, ref3)

    print("KERNEL_OK")
</pallas_src>

<mosaic_0001>
module attributes {stable_mosaic.version = 11 : i64} {
  func.func @_triplet_loss_kernel(%arg0: i32, %arg1: memref<16x128xf32, #tpu.memory_space<vmem>>, %arg2: memref<16x128xf32, #tpu.memory_space<vmem>>, %arg3: memref<16x128xf32, #tpu.memory_space<vmem>>, %arg4: memref<1x1xf32, #tpu.memory_space<vmem>>, %arg5: memref<16x1xf32, #tpu.memory_space<vmem>>) attributes {dimension_semantics = [#tpu.dimension_semantics<arbitrary>], iteration_bounds = array<i64: 1>, scalar_prefetch = 0 : i64, scratch_operands = 1 : i64, tpu.core_type = #tpu.core_type<tc>, window_params = [{transform_indices = @transform_0, window_bounds = array<i64: 16, 128>}, {transform_indices = @transform_1, window_bounds = array<i64: 16, 128>}, {transform_indices = @transform_2, window_bounds = array<i64: 16, 128>}, {pipeline_mode = #tpu.pipeline_mode<synchronous>, transform_indices = @transform_3, window_bounds = array<i64: 1, 1>}]} {
    %c0_i32 = arith.constant 0 : i32
    %0 = arith.cmpi eq, %arg0, %c0_i32 : i32
    %1 = arith.extui %0 : i1 to i32
    %c0_i32_0 = arith.constant 0 : i32
    %2 = arith.cmpi ne, %1, %c0_i32_0 : i32
    scf.if %2 {
      %cst_16 = arith.constant 0.000000e+00 : f32
      %26 = vector.broadcast %cst_16 : f32 to vector<16x1xf32>
      %c0_17 = arith.constant 0 : index
      %c0_18 = arith.constant 0 : index
      %27 = vector.load %arg5[%c0_17, %c0_18] : memref<16x1xf32, #tpu.memory_space<vmem>>, vector<16x1xf32>
      tpu.vector_store %arg5[%c0_17, %c0_18], %26 {strides = array<i32>} : memref<16x1xf32, #tpu.memory_space<vmem>>, vector<16x1xf32>,
    } else {
    }
    %c0 = arith.constant 0 : index
    %c0_1 = arith.constant 0 : index
    %3 = vector.load %arg1[%c0, %c0_1] : memref<16x128xf32, #tpu.memory_space<vmem>>, vector<16x128xf32>
    %c0_2 = arith.constant 0 : index
    %c0_3 = arith.constant 0 : index
    %4 = vector.load %arg2[%c0_2, %c0_3] : memref<16x128xf32, #tpu.memory_space<vmem>>, vector<16x128xf32>
    %c0_4 = arith.constant 0 : index
    %c0_5 = arith.constant 0 : index
    %5 = vector.load %arg3[%c0_4, %c0_5] : memref<16x128xf32, #tpu.memory_space<vmem>>, vector<16x128xf32>
    %6 = arith.subf %5, %4 : vector<16x128xf32>
    %cst = arith.constant 2.000000e+00 : f32
    %7 = vector.broadcast %cst : f32 to vector<16x128xf32>
    %8 = arith.mulf %7, %3 : vector<16x128xf32>
    %9 = arith.subf %8, %4 : vector<16x128xf32>
    %10 = arith.subf %9, %5 : vector<16x128xf32>
    %cst_6 = arith.constant 2.000000e-06 : f32
    %11 = vector.broadcast %cst_6 : f32 to vector<16x128xf32>
    %12 = arith.addf %10, %11 : vector<16x128xf32>
    %13 = arith.mulf %6, %12 : vector<16x128xf32>
    %cst_7 = arith.constant dense<0.000000e+00> : vector<16xf32>
    %14 = vector.multi_reduction <add>, %13, %cst_7 [1] : vector<16x128xf32> to vector<16xf32>
    %15 = vector.shape_cast %14 : vector<16xf32> to vector<16x1xf32>
    %cst_8 = arith.constant 4.500000e+01 : f32
    %16 = vector.broadcast %cst_8 : f32 to vector<16x1xf32>
    %17 = arith.addf %15, %16 : vector<16x1xf32>
    %cst_9 = arith.constant 0.000000e+00 : f32
    %18 = vector.broadcast %cst_9 : f32 to vector<16x1xf32>
    %19 = arith.maximumf %17, %18 : vector<16x1xf32>
    %c0_10 = arith.constant 0 : index
    %c0_11 = arith.constant 0 : index
    %20 = vector.load %arg5[%c0_10, %c0_11] : memref<16x1xf32, #tpu.memory_space<vmem>>, vector<16x1xf32>
    %21 = arith.addf %20, %19 : vector<16x1xf32>
    %c0_12 = arith.constant 0 : index
    %c0_13 = arith.constant 0 : index
    %22 = vector.load %arg5[%c0_12, %c0_13] : memref<16x1xf32, #tpu.memory_space<vmem>>, vector<16x1xf32>
    tpu.vector_store %arg5[%c0_12, %c0_13], %21 {strides = array<i32>} : memref<16x1xf32, #tpu.memory_space<vmem>>, vector<16x1xf32>,
    %c0_i32_14 = arith.constant 0 : i32
    %23 = arith.cmpi eq, %arg0, %c0_i32_14 : i32
    %24 = arith.extui %23 : i1 to i32
    %c0_i32_15 = arith.constant 0 : i32
    %25 = arith.cmpi ne, %24, %c0_i32_15 : i32
    scf.if %25 {
      %c0_16 = arith.constant 0 : index
      %c0_17 = arith.constant 0 : index
      %26 = vector.load %arg5[%c0_16, %c0_17] : memref<16x1xf32, #tpu.memory_space<vmem>>, vector<16x1xf32>
      %27 = vector.shape_cast %26 : vector<16x1xf32> to vector<1x16x1xf32>
      %cst_18 = arith.constant dense<0.000000e+00> : vector<1xf32>
      %28 = vector.multi_reduction <add>, %27, %cst_18 [1, 2] : vector<1x16x1xf32> to vector<1xf32>
      %29 = vector.shape_cast %28 : vector<1xf32> to vector<1x1x1xf32>
      %30 = vector.extract %29[0, 0, 0] : f32 from vector<1x1x1xf32>
      %31 = vector.broadcast %30 : f32 to vector<1x1xf32>
      %c0_19 = arith.constant 0 : index
      %c0_20 = arith.constant 0 : index
      %32 = vector.load %arg4[%c0_19, %c0_20] : memref<1x1xf32, #tpu.memory_space<vmem>>, vector<1x1xf32>
      tpu.vector_store %arg4[%c0_19, %c0_20], %31 {strides = array<i32>} : memref<1x1xf32, #tpu.memory_space<vmem>>, vector<1x1xf32>,
    } else {
    }
    return
  }
  func.func @transform_0(%arg0: i32) -> (i32, i32) {
    %c0_i32 = arith.constant 0 : i32
    %c0_i32_0 = arith.constant 0 : i32
    return %arg0, %c0_i32 : i32, i32
  }
  func.func @transform_1(%arg0: i32) -> (i32, i32) {
    %c0_i32 = arith.constant 0 : i32
    %c0_i32_0 = arith.constant 0 : i32
    return %arg0, %c0_i32 : i32, i32
  }
  func.func @transform_2(%arg0: i32) -> (i32, i32) {
    %c0_i32 = arith.constant 0 : i32
    %c0_i32_0 = arith.constant 0 : i32
    return %arg0, %c0_i32 : i32, i32
  }
  func.func @transform_3(%arg0: i32) -> (i32, i32) {
    %c0_i32 = arith.constant 0 : i32
    %c0_i32_0 = arith.constant 0 : i32
    %c0_i32_1 = arith.constant 0 : i32
    return %c0_i32, %c0_i32_0 : i32, i32
  }
}

</mosaic_0001>

<bundles_post_ra>
// kernel: tpu_custom_call.1
= control target key start
LH: loop header
LB: loop body
LE: loop exit
PB: predicated region body
PF: predicated region fallthrough
CT: control target
= control target key end

     0   :  { %8 = vsyncpa [#allocation4], 0  ;;  %s332_s0 = inlined_call_operand.hbm [shape: f32[16,128], index: 0, kind: input, shape index: {}]   ;;  %s333_s1 = inlined_call_operand.hbm [shape: f32[16,128], index: 1, kind: input, shape index: {}]   ;;  %s334_s2 = inlined_call_operand.hbm [shape: f32[16,128], index: 2, kind: input, shape index: {}]   ;;  %s335_s3 = inlined_call_operand.hbm [shape: f32[1,1], index: 3, kind: output, shape index: {}]  }
   0x1   :  { %9 = vsyncpa [#allocation7], 0 }
   0x2   :  { %10 = vsyncpa [#allocation5], 0  ;;  %s235_s12 = smov [#allocation6]   ;;  %s236_s14 = smov [#allocation3]  }
   0x3   :  { %s28_s13 = sshll.u32 %s235_s12, 4  ;;  %s16_s15 = sshll.u32 %s236_s14, 4  ;;  %s29_s13 = int_to_ptr.vmem [resolvable:$true] %s28_s13  ;;  %s262_s15 = int_to_ptr.vmem [resolvable:$true] %s16_s15 }
   0x4   :  { %s141_s18 = scalar_lea.hbm %s333_s1, 256 }
   0x5   :  { %p142_p0 = scmp.ne.s32.totalorder %s333_s1, %s141_s18  ;;  %p145_p1 = scmp.lt.u32.totalorder %s141_s18, %s333_s1 }
   0x7   :  { %p147_p2 = pnand %p145_p1, %p142_p0 }
   0x9   :  { %150 = shalt.err (!%p147_p2)
}
   0xa   :  { %s151_s23 = scalar_lea.vmem %s29_s13, 256  ;;  %p156_p4 = scmp.lt.s32.totalorder %s29_s13, %s29_s13 }
   0xb   :  { %p152_p3 = scmp.ne.s32.totalorder %s29_s13, %s151_s23  ;;  %p157_p5 = scmp.lt.s32.totalorder %s151_s23, %s151_s23 }
   0xd   :  { %p158_p6 = por %p157_p5, %p156_p4 }
   0xf   :  { %p159_p7 = pnand %p158_p6, %p152_p3 }
  0x11   :  { %162 = shalt.err (!%p159_p7)
}
  0x12   :  { %s237_s24 = smov 128   ;;  %s238_s25 = smov 8  }
  0x13   :  { %34 = dma.hbm_to_vmem [thread:$0]  %s333_s1, 256, %s29_s13, [#allocation7], %s237_s24, %s237_s24, %s238_s25  }
  0x14   :  { %s163_s30 = scalar_lea.hbm %s332_s0, 256 }
  0x15   :  { %p164_p8 = scmp.ne.s32.totalorder %s332_s0, %s163_s30  ;;  %p167_p9 = scmp.lt.u32.totalorder %s163_s30, %s332_s0 }
  0x17   :  { %p169_p10 = pnand %p167_p9, %p164_p8 }
  0x19   :  { %172 = shalt.err (!%p169_p10)
}
  0x1a   :  { %s173_s8 = scalar_lea.vmem %s262_s15, 256  ;;  %p178_p12 = scmp.lt.s32.totalorder %s262_s15, %s262_s15 }
  0x1b   :  { %p174_p11 = scmp.ne.s32.totalorder %s262_s15, %s173_s8  ;;  %p179_p13 = scmp.lt.s32.totalorder %s173_s8, %s173_s8 }
  0x1d   :  { %p180_p0 = por %p179_p13, %p178_p12 }
  0x1f   :  { %p181_p1 = pnand %p180_p0, %p174_p11 }
  0x21   :  { %184 = shalt.err (!%p181_p1)
}
  0x22   :  { %22 = dma.hbm_to_vmem [thread:$0]  %s332_s0, 256, %s262_s15, [#allocation4], %s237_s24, %s237_s24, %s238_s25  }
  0x23   :  { %s239_s10 = smov [#allocation8]   ;;  %s185_s14 = scalar_lea.hbm %s334_s2, 256 }
  0x24   :  { %s40_s11 = sshll.u32 %s239_s10, 4  ;;  %p186_p2 = scmp.ne.s32.totalorder %s334_s2, %s185_s14  ;;  %s41_s11 = int_to_ptr.vmem [resolvable:$true] %s40_s11 }
  0x25   :  { %p189_p3 = scmp.lt.u32.totalorder %s185_s14, %s334_s2 }
  0x27   :  { %p191_p4 = pnand %p189_p3, %p186_p2 }
  0x29   :  { %194 = shalt.err (!%p191_p4)
}
  0x2a   :  { %s195_s20 = scalar_lea.vmem %s41_s11, 256  ;;  %p200_p6 = scmp.lt.s32.totalorder %s41_s11, %s41_s11 }
  0x2b   :  { %p196_p5 = scmp.ne.s32.totalorder %s41_s11, %s195_s20  ;;  %p201_p7 = scmp.lt.s32.totalorder %s195_s20, %s195_s20 }
  0x2d   :  { %p202_p8 = por %p201_p7, %p200_p6 }
  0x2f   :  { %p203_p9 = pnand %p202_p8, %p196_p5 }
  0x31   :  { %206 = shalt.err (!%p203_p9)
}
  0x32   :  { %46 = dma.hbm_to_vmem [thread:$0]  %s334_s2, 256, %s41_s11, [#allocation7], %s237_s24, %s237_s24, %s238_s25  }
  0x33   :  { %229 = dma.done.wait [#allocation4], 256  }
  0x34   :  { %230 = vsyncadd [#allocation4], 4294967040 }
  0x35   :  { %231 = dma.done.wait [#allocation7], 512  }
  0x36   :  { %232 = vsyncadd [#allocation7], 4294966784  ;;  %vm60_vm0 = vcmask 7168   ;;  %v240_v0 = vmov 0.0   ;;  %v63_v1 = vld [vmem:[#allocation3] sm:$0xff]  ;;  %v65_v2 = vld [vmem:[#allocation6] sm:$0xff] }
  0x37   :  { %61 = vst.msk [vmem:[#allocation2] sm:$0xff] %vm60_vm0, %v240_v0  ;;  %62 = vst.msk [vmem:[#allocation2 + $0x8] sm:$0xff] %vm60_vm0, %v240_v0  ;;  %v71_v3 = vmul.f32 2.0, %v63_v1  ;;  %v64_v4 = vld [vmem:[#allocation3 + $0x8] sm:$0xff]  ;;  %v66_v5 = vld [vmem:[#allocation6 + $0x8] sm:$0xff]  ;;  %s241_s2 = smov [#allocation9]  }
  0x38   :  { %v67_v6 = vld [vmem:[#allocation8] sm:$0xff]  ;;  %v72_v7 = vmul.f32 2.0, %v64_v4  ;;  %v68_v9 = vld [vmem:[#allocation8 + $0x8] sm:$0xff]  ;;  %s122_s21 = sshll.u32 %s241_s2, 4  ;;  %vm114_vm1 = vcmask 0   ;;  %s123_s21 = int_to_ptr.vmem [resolvable:$true] %s122_s21 }
  0x39   :  { %v73_v8 = vsub.f32 %v71_v3, %v65_v2  ;;  %v69_v11 = vsub.f32 %v67_v6, %v65_v2  ;;  %v70_v15 = vsub.f32 %v68_v9, %v66_v5  ;;  %s207_s23 = scalar_lea.vmem %s123_s21, 16  ;;  %s211_s24 = scalar_lea.vmem %s123_s21, 32 }
  0x3a   :  { %v74_v10 = vsub.f32 %v72_v7, %v66_v5  ;;  %p208_p10 = scmp.ne.s32.totalorder %s123_s21, %s207_s23  ;;  %p212_p11 = scmp.lt.s32.totalorder %s123_s21, %s123_s21 }
  0x3b   :  { %v75_v12 = vsub.f32 %v73_v8, %v67_v6  ;;  %p213_p12 = scmp.lt.s32.totalorder %s211_s24, %s207_s23 }
  0x3c   :  { %v76_v13 = vsub.f32 %v74_v10, %v68_v9 }
  0x3d   :  { %v77_v14 = vadd.f32 2e-06, %v75_v12  ;;  %p214_p13 = por %p213_p12, %p212_p11 }
  0x3e   :  { %v78_v16 = vadd.f32 2e-06, %v76_v13  ;;  %v89_v21 = vld [vmem:[#allocation2] sm:$0xff]  ;;  %v90_v26 = vld [vmem:[#allocation2 + $0x8] sm:$0xff] }
  0x3f   :  { %v79_v17 = vmul.f32 %v77_v14, %v69_v11  ;;  %p215_p0 = pnand %p214_p13, %p208_p10 }
  0x40   :  { %v80_v18 = vmul.f32 %v78_v16, %v70_v15 }
  0x41   :  { %81 = vadd.xlane.f32.xlu0 %v79_v17 }
  0x45   :  { %83 = vadd.xlane.f32.xlu0 %v80_v18 }
  0xce   :  { %v82_v19 = vpop.xlane.xlu0 %81 }
  0xcf   :  { %v85_v20 = vadd.f32 45.0, %v82_v19 }
  0xd1   :  { %v87_v22 = vmax.f32 %v85_v20, 0.0 }
  0xd2   :  { %v84_v23 = vpop.xlane.xlu0 %83 }
  0xd3   :  { %v91_v24 = vadd.f32 %v89_v21, %v87_v22  ;;  %v86_v25 = vadd.f32 45.0, %v84_v23 }
  0xd5   :  { %94 = vst.msk [vmem:[#allocation2] sm:$0xff] %vm60_vm0, %v91_v24  ;;  %v88_v27 = vmax.f32 %v86_v25, 0.0 }
  0xd7   :  { %v92_v28 = vadd.f32 %v90_v26, %v88_v27 }
  0xd9   :  { %95 = vst.msk [vmem:[#allocation2 + $0x8] sm:$0xff] %vm60_vm0, %v92_v28 }
  0xdc   :  { %v99_v29 = vld [vmem:[#allocation2] sm:$0xff] }
  0xdd   :  { %v101_v31 = vsel %vm60_vm0, %v99_v29, 0.0 }
  0xe0   :  { %v100_v30 = vld [vmem:[#allocation2 + $0x8] sm:$0xff] }
  0xe1   :  { %v102_v32 = vsel %vm60_vm0, %v100_v30, 0.0 }
  0xe2   :  { %v103_v33 = vadd.f32 %v102_v32, %v101_v31 }
  0xe4   :  { %104 = vadd.xlane.f32.xlu1 %v103_v33 }
 0x171   :  { %v105_v34 = vpop.xlane.xlu1 %104 }
 0x172   :  { %v106_v35 = vrot.slane %v105_v34, 4 }
 0x174   :  { %v107_v36 = vadd.f32 %v106_v35, %v105_v34 }
 0x176   :  { %v108_v37 = vrot.slane %v107_v36, 2 }
 0x178   :  { %v109_v38 = vadd.f32 %v108_v37, %v107_v36 }
 0x17a   :  { %v110_v39 = vrot.slane %v109_v38, 1 }
 0x17c   :  { %v111_v40 = vadd.f32 %v110_v39, %v109_v38 }
 0x17e   :  { %132 = vpush %v111_v40 }
 0x1af   :  { %s133_s22 = spop %132 }
 0x1b0   :  { %v113_v41 = vstv %s133_s22 }
 0x1b1   :  { %115 = vst.msk [vmem:[#allocation9] sm:$0x1] %vm114_vm1, %v113_v41 }
 0x1b2   :  { %218 = shalt.err (!%p215_p0)
}
 0x1b3   :  { %s219_s27 = scalar_lea.hbm %s335_s3, 16 }
 0x1b4   :  { %p220_p1 = scmp.ne.s32.totalorder %s335_s3, %s219_s27  ;;  %p223_p2 = scmp.lt.u32.totalorder %s219_s27, %s335_s3 }
 0x1b6   :  { %p225_p3 = pnand %p223_p2, %p220_p1 }
 0x1b8   :  { %228 = shalt.err (!%p225_p3)
}
 0x1b9   :  { %125 = dma.vmem_to_hbm [thread:$0]  %s123_s21, 16, %s335_s3, [#allocation5]  }
 0x1ba   :  { %233 = dma.done.wait [#allocation5], 16  }
 0x1bb   :  { %234 = vsyncadd [#allocation5], 4294967280 }
 0x1bc   :  { %129 = vsyncpa [#allocation4], 1 }
 0x1bd   :  { %130 = vsyncpa [#allocation7], 1 }
 0x1be   :  { %131 = vsyncpa [#allocation5], 1 }

</bundles_post_ra>
